<compile_context>
chip_gen: v6e
topology: v6e:2x2x1
jax: 0.10.0
libtpu: 0.0.40
codegen_flags: <defaults>
</compile_context>

<pallas_src>
import jax
import jax.numpy as jnp
from jax.experimental import pallas as pl
from jax.experimental.pallas import tpu as pltpu

IN_DIM = 3
HIDDEN = 200
HIDDEN_PAD = 256     # zero-padded hidden width (lane-aligned)
OUT_DIM = 128
MAX_TILE_B = 256     # batch rows per grid step


def _round_up(n, m):
    return ((n + m - 1) // m) * m


def _mlp_kernel(x_ref, w1_ref, b1_ref, w2_ref, b2_ref, w3_ref, b3_ref,
                o_ref, h1_ref, h2_ref):
    x = x_ref[...]                       # (tile_b, 3)   f32
    w1 = w1_ref[...]                     # (3, 256)      f32

    # Layer 1: K=3 is far too shallow for the MXU -> three VPU rank-1 (outer product)
    # updates; the VPU slots are otherwise idle while the real matmuls own the MXU.
    h1 = b1_ref[...]                                     # (1, 256) broadcasts over rows
    h1 = h1 + x[:, 0:1] * w1[0:1, :]
    h1 = h1 + x[:, 1:2] * w1[1:1 + 1, :]
    h1 = h1 + x[:, 2:3] * w1[2:3, :]
    h1 = jnp.maximum(h1, 0.0)
    h1_ref[...] = h1.astype(jnp.bfloat16)                # stage to VMEM scratch (bf16)

    # Layer 2: (tile_b,256) @ (256,256) on the MXU, bf16 in / f32 accumulate.
    h2 = jnp.dot(h1_ref[...], w2_ref[...], preferred_element_type=jnp.float32)
    h2 = jnp.maximum(h2 + b2_ref[...], 0.0)
    h2_ref[...] = h2.astype(jnp.bfloat16)

    # Layer 3: (tile_b,256) @ (256,128), no activation.
    out = jnp.dot(h2_ref[...], w3_ref[...], preferred_element_type=jnp.float32)
    o_ref[...] = (out + b3_ref[...]).astype(o_ref.dtype)


def context_encoder_forward(x, p):
    """x: (B, 3) float32. p: prepared (padded / bf16) params from prepare_params()."""
    B = x.shape[0]
    tile_b = min(MAX_TILE_B, _round_up(B, 16))
    b_pad = _round_up(B, tile_b)
    if b_pad != B:
        x = jnp.pad(x, ((0, b_pad - B), (0, 0)))
    grid = (b_pad // tile_b,)

    w1, b1, w2, b2, w3, b3 = p["w1"], p["b1"], p["w2"], p["b2"], p["w3"], p["b3"]

    def full(arr):  # full-array block, same tile every grid step (no re-DMA)
        return pl.BlockSpec(arr.shape, lambda i: (0,) * arr.ndim)

    flops = 2 * b_pad * (IN_DIM * HIDDEN_PAD
                         + HIDDEN_PAD * HIDDEN_PAD
                         + HIDDEN_PAD * OUT_DIM)
    bytes_accessed = (x.size * 4 + b_pad * OUT_DIM * 4
                      + w1.size * 4 + b1.size * 4
                      + w2.size * 2 + b2.size * 4
                      + w3.size * 2 + b3.size * 4)

    out = pl.pallas_call(
        _mlp_kernel,
        out_shape=jax.ShapeDtypeStruct((b_pad, OUT_DIM), jnp.float32),
        grid=grid,
        in_specs=[
            pl.BlockSpec((tile_b, IN_DIM), lambda i: (i, 0)),
            full(w1), full(b1), full(w2), full(b2), full(w3), full(b3),
        ],
        out_specs=pl.BlockSpec((tile_b, OUT_DIM), lambda i: (i, 0)),
        scratch_shapes=[
            pltpu.VMEM((tile_b, HIDDEN_PAD), jnp.bfloat16),   # h1
            pltpu.VMEM((tile_b, HIDDEN_PAD), jnp.bfloat16),   # h2
        ],
        compiler_params=pltpu.CompilerParams(
            dimension_semantics=("parallel",)),
        cost_estimate=pl.CostEstimate(flops=flops, transcendentals=0,
                                      bytes_accessed=bytes_accessed),
    )(x, w1, b1, w2, b2, w3, b3)
    return out[:B]


def init_params(key):
    """PyTorch nn.Linear-style init; weights stored transposed as (in, out), biases (1, out)."""
    dims = [(IN_DIM, HIDDEN), (HIDDEN, HIDDEN), (HIDDEN, OUT_DIM)]
    params = {}
    for i, (fan_in, fan_out) in enumerate(dims, start=1):
        key, kw, kb = jax.random.split(key, 3)
        bound = 1.0 / jnp.sqrt(float(fan_in))
        params[f"w{i}"] = jax.random.uniform(
            kw, (fan_in, fan_out), jnp.float32, minval=-bound, maxval=bound)
        params[f"b{i}"] = jax.random.uniform(
            kb, (1, fan_out), jnp.float32, minval=-bound, maxval=bound)
    return params


def prepare_params(params):
    """Zero-pad hidden 200 -> 256 and cast the MXU-facing weights to bf16."""
    w1 = jnp.zeros((IN_DIM, HIDDEN_PAD), jnp.float32).at[:, :HIDDEN].set(params["w1"])
    b1 = jnp.zeros((1, HIDDEN_PAD), jnp.float32).at[:, :HIDDEN].set(params["b1"])
    w2 = (jnp.zeros((HIDDEN_PAD, HIDDEN_PAD), jnp.float32)
          .at[:HIDDEN, :HIDDEN].set(params["w2"]).astype(jnp.bfloat16))
    b2 = jnp.zeros((1, HIDDEN_PAD), jnp.float32).at[:, :HIDDEN].set(params["b2"])
    w3 = (jnp.zeros((HIDDEN_PAD, OUT_DIM), jnp.float32)
          .at[:HIDDEN, :].set(params["w3"]).astype(jnp.bfloat16))
    b3 = params["b3"].astype(jnp.float32)
    return dict(w1=w1, b1=b1, w2=w2, b2=b2, w3=w3, b3=b3)


def _reference_forward(x, params):
    h1 = jnp.maximum(x @ params["w1"] + params["b1"], 0.0)
    h2 = jnp.maximum(h1 @ params["w2"] + params["b2"], 0.0)
    return h2 @ params["w3"] + params["b3"]


if __name__ == "__main__":
    key = jax.random.PRNGKey(0)
    key, kx = jax.random.split(key)

    B = 8  # small batch
    x = jax.random.normal(kx, (B, IN_DIM), jnp.float32)

    params = init_params(key)
    prepared = prepare_params(params)

    out = jax.block_until_ready(context_encoder_forward(x, prepared))
    ref = _reference_forward(x, params)
    assert out.shape == (B, OUT_DIM), out.shape
    # bf16 weights/activations on the MXU path -> looser tolerance than pure f32
    assert jnp.allclose(out, ref, atol=2e-2, rtol=2e-2), "mismatch vs JAX reference (B=8)"

    # Exercise the batch grid + ragged-batch padding path.
    B2 = 300
    x2 = jax.random.normal(jax.random.PRNGKey(1), (B2, IN_DIM), jnp.float32)
    out2 = jax.block_until_ready(context_encoder_forward(x2, prepared))
    ref2 = _reference_forward(x2, params)
    assert out2.shape == (B2, OUT_DIM), out2.shape
    assert jnp.allclose(out2, ref2, atol=2e-2, rtol=2e-2), "mismatch vs JAX reference (B=300)"

    print("KERNEL_OK")
</pallas_src>

<mosaic_0001>
module attributes {stable_mosaic.version = 11 : i64} {
  func.func @_mlp_kernel(%arg0: i32, %arg1: memref<16x3xf32, #tpu.memory_space<vmem>>, %arg2: memref<3x256xf32, #tpu.memory_space<vmem>>, %arg3: memref<1x256xf32, #tpu.memory_space<vmem>>, %arg4: memref<256x256xbf16, #tpu.memory_space<vmem>>, %arg5: memref<1x256xf32, #tpu.memory_space<vmem>>, %arg6: memref<256x128xbf16, #tpu.memory_space<vmem>>, %arg7: memref<1x128xf32, #tpu.memory_space<vmem>>, %arg8: memref<16x128xf32, #tpu.memory_space<vmem>>, %arg9: memref<16x256xbf16, #tpu.memory_space<vmem>>, %arg10: memref<16x256xbf16, #tpu.memory_space<vmem>>) attributes {dimension_semantics = [#tpu.dimension_semantics<parallel>], iteration_bounds = array<i64: 1>, scalar_prefetch = 0 : i64, scratch_operands = 2 : i64, tpu.core_type = #tpu.core_type<tc>, window_params = [{transform_indices = @transform_0, window_bounds = array<i64: 16, 3>}, {pipeline_mode = #tpu.pipeline_mode<synchronous>, transform_indices = @transform_1, window_bounds = array<i64: 3, 256>}, {pipeline_mode = #tpu.pipeline_mode<synchronous>, transform_indices = @transform_2, window_bounds = array<i64: 1, 256>}, {pipeline_mode = #tpu.pipeline_mode<synchronous>, transform_indices = @transform_3, window_bounds = array<i64: 256, 256>}, {pipeline_mode = #tpu.pipeline_mode<synchronous>, transform_indices = @transform_4, window_bounds = array<i64: 1, 256>}, {pipeline_mode = #tpu.pipeline_mode<synchronous>, transform_indices = @transform_5, window_bounds = array<i64: 256, 128>}, {pipeline_mode = #tpu.pipeline_mode<synchronous>, transform_indices = @transform_6, window_bounds = array<i64: 1, 128>}, {transform_indices = @transform_7, window_bounds = array<i64: 16, 128>}]} {
    %c0 = arith.constant 0 : index
    %c0_0 = arith.constant 0 : index
    %0 = vector.load %arg1[%c0, %c0_0] : memref<16x3xf32, #tpu.memory_space<vmem>>, vector<16x3xf32>
    %c0_1 = arith.constant 0 : index
    %c0_2 = arith.constant 0 : index
    %1 = vector.load %arg2[%c0_1, %c0_2] : memref<3x256xf32, #tpu.memory_space<vmem>>, vector<3x256xf32>
    %c0_3 = arith.constant 0 : index
    %c0_4 = arith.constant 0 : index
    %2 = vector.load %arg3[%c0_3, %c0_4] : memref<1x256xf32, #tpu.memory_space<vmem>>, vector<1x256xf32>
    %3 = vector.extract_strided_slice %0 {offsets = [0, 0], sizes = [16, 1], strides = [1, 1]} : vector<16x3xf32> to vector<16x1xf32>
    %4 = vector.extract_strided_slice %1 {offsets = [0, 0], sizes = [1, 256], strides = [1, 1]} : vector<3x256xf32> to vector<1x256xf32>
    %5 = vector.broadcast %3 : vector<16x1xf32> to vector<16x256xf32>
    %6 = vector.broadcast %4 : vector<1x256xf32> to vector<16x256xf32>
    %7 = arith.mulf %5, %6 : vector<16x256xf32>
    %8 = vector.broadcast %2 : vector<1x256xf32> to vector<16x256xf32>
    %9 = arith.addf %8, %7 : vector<16x256xf32>
    %10 = vector.extract_strided_slice %0 {offsets = [0, 1], sizes = [16, 1], strides = [1, 1]} : vector<16x3xf32> to vector<16x1xf32>
    %11 = vector.extract_strided_slice %1 {offsets = [1, 0], sizes = [1, 256], strides = [1, 1]} : vector<3x256xf32> to vector<1x256xf32>
    %12 = vector.broadcast %10 : vector<16x1xf32> to vector<16x256xf32>
    %13 = vector.broadcast %11 : vector<1x256xf32> to vector<16x256xf32>
    %14 = arith.mulf %12, %13 : vector<16x256xf32>
    %15 = arith.addf %9, %14 : vector<16x256xf32>
    %16 = vector.extract_strided_slice %0 {offsets = [0, 2], sizes = [16, 1], strides = [1, 1]} : vector<16x3xf32> to vector<16x1xf32>
    %17 = vector.extract_strided_slice %1 {offsets = [2, 0], sizes = [1, 256], strides = [1, 1]} : vector<3x256xf32> to vector<1x256xf32>
    %18 = vector.broadcast %16 : vector<16x1xf32> to vector<16x256xf32>
    %19 = vector.broadcast %17 : vector<1x256xf32> to vector<16x256xf32>
    %20 = arith.mulf %18, %19 : vector<16x256xf32>
    %21 = arith.addf %15, %20 : vector<16x256xf32>
    %cst = arith.constant 0.000000e+00 : f32
    %22 = vector.broadcast %cst : f32 to vector<16x256xf32>
    %23 = arith.maximumf %21, %22 : vector<16x256xf32>
    %24 = arith.truncf %23 : vector<16x256xf32> to vector<16x256xbf16>
    %c0_5 = arith.constant 0 : index
    %c0_6 = arith.constant 0 : index
    %25 = vector.load %arg9[%c0_5, %c0_6] : memref<16x256xbf16, #tpu.memory_space<vmem>>, vector<16x256xbf16>
    tpu.vector_store %arg9[%c0_5, %c0_6], %24 {strides = array<i32>} : memref<16x256xbf16, #tpu.memory_space<vmem>>, vector<16x256xbf16>,
    %c0_7 = arith.constant 0 : index
    %c0_8 = arith.constant 0 : index
    %26 = vector.load %arg9[%c0_7, %c0_8] : memref<16x256xbf16, #tpu.memory_space<vmem>>, vector<16x256xbf16>
    %c0_9 = arith.constant 0 : index
    %c0_10 = arith.constant 0 : index
    %27 = vector.load %arg4[%c0_9, %c0_10] : memref<256x256xbf16, #tpu.memory_space<vmem>>, vector<256x256xbf16>
    %cst_11 = arith.constant dense<0.000000e+00> : vector<16x256xf32>
    %28 = tpu.matmul %26, %27, %cst_11 {dimension_numbers = #tpu.dot_dimension_numbers<[1], [0], [0], [1], [0, 0, 1, 1], [], []>} : vector<16x256xbf16>, vector<256x256xbf16>, vector<16x256xf32> -> vector<16x256xf32>
    %c0_12 = arith.constant 0 : index
    %c0_13 = arith.constant 0 : index
    %29 = vector.load %arg5[%c0_12, %c0_13] : memref<1x256xf32, #tpu.memory_space<vmem>>, vector<1x256xf32>
    %30 = vector.broadcast %29 : vector<1x256xf32> to vector<16x256xf32>
    %31 = arith.addf %28, %30 : vector<16x256xf32>
    %cst_14 = arith.constant 0.000000e+00 : f32
    %32 = vector.broadcast %cst_14 : f32 to vector<16x256xf32>
    %33 = arith.maximumf %31, %32 : vector<16x256xf32>
    %34 = arith.truncf %33 : vector<16x256xf32> to vector<16x256xbf16>
    %c0_15 = arith.constant 0 : index
    %c0_16 = arith.constant 0 : index
    %35 = vector.load %arg10[%c0_15, %c0_16] : memref<16x256xbf16, #tpu.memory_space<vmem>>, vector<16x256xbf16>
    tpu.vector_store %arg10[%c0_15, %c0_16], %34 {strides = array<i32>} : memref<16x256xbf16, #tpu.memory_space<vmem>>, vector<16x256xbf16>,
    %c0_17 = arith.constant 0 : index
    %c0_18 = arith.constant 0 : index
    %36 = vector.load %arg10[%c0_17, %c0_18] : memref<16x256xbf16, #tpu.memory_space<vmem>>, vector<16x256xbf16>
    %c0_19 = arith.constant 0 : index
    %c0_20 = arith.constant 0 : index
    %37 = vector.load %arg6[%c0_19, %c0_20] : memref<256x128xbf16, #tpu.memory_space<vmem>>, vector<256x128xbf16>
    %cst_21 = arith.constant dense<0.000000e+00> : vector<16x128xf32>
    %38 = tpu.matmul %36, %37, %cst_21 {dimension_numbers = #tpu.dot_dimension_numbers<[1], [0], [0], [1], [0, 0, 1, 1], [], []>} : vector<16x256xbf16>, vector<256x128xbf16>, vector<16x128xf32> -> vector<16x128xf32>
    %c0_22 = arith.constant 0 : index
    %c0_23 = arith.constant 0 : index
    %39 = vector.load %arg7[%c0_22, %c0_23] : memref<1x128xf32, #tpu.memory_space<vmem>>, vector<1x128xf32>
    %40 = vector.broadcast %39 : vector<1x128xf32> to vector<16x128xf32>
    %41 = arith.addf %38, %40 : vector<16x128xf32>
    %c0_24 = arith.constant 0 : index
    %c0_25 = arith.constant 0 : index
    %42 = vector.load %arg8[%c0_24, %c0_25] : memref<16x128xf32, #tpu.memory_space<vmem>>, vector<16x128xf32>
    tpu.vector_store %arg8[%c0_24, %c0_25], %41 {strides = array<i32>} : memref<16x128xf32, #tpu.memory_space<vmem>>, vector<16x128xf32>,
    return
  }
  func.func @transform_0(%arg0: i32) -> (i32, i32) {
    %c0_i32 = arith.constant 0 : i32
    %c0_i32_0 = arith.constant 0 : i32
    return %arg0, %c0_i32 : i32, i32
  }
  func.func @transform_1(%arg0: i32) -> (i32, i32) {
    %c0_i32 = arith.constant 0 : i32
    %c0_i32_0 = arith.constant 0 : i32
    %c0_i32_1 = arith.constant 0 : i32
    return %c0_i32, %c0_i32_0 : i32, i32
  }
  func.func @transform_2(%arg0: i32) -> (i32, i32) {
    %c0_i32 = arith.constant 0 : i32
    %c0_i32_0 = arith.constant 0 : i32
    %c0_i32_1 = arith.constant 0 : i32
    return %c0_i32, %c0_i32_0 : i32, i32
  }
  func.func @transform_3(%arg0: i32) -> (i32, i32) {
    %c0_i32 = arith.constant 0 : i32
    %c0_i32_0 = arith.constant 0 : i32
    %c0_i32_1 = arith.constant 0 : i32
    return %c0_i32, %c0_i32_0 : i32, i32
  }
  func.func @transform_4(%arg0: i32) -> (i32, i32) {
    %c0_i32 = arith.constant 0 : i32
    %c0_i32_0 = arith.constant 0 : i32
    %c0_i32_1 = arith.constant 0 : i32
    return %c0_i32, %c0_i32_0 : i32, i32
  }
  func.func @transform_5(%arg0: i32) -> (i32, i32) {
    %c0_i32 = arith.constant 0 : i32
    %c0_i32_0 = arith.constant 0 : i32
    %c0_i32_1 = arith.constant 0 : i32
    return %c0_i32, %c0_i32_0 : i32, i32
  }
  func.func @transform_6(%arg0: i32) -> (i32, i32) {
    %c0_i32 = arith.constant 0 : i32
    %c0_i32_0 = arith.constant 0 : i32
    %c0_i32_1 = arith.constant 0 : i32
    return %c0_i32, %c0_i32_0 : i32, i32
  }
  func.func @transform_7(%arg0: i32) -> (i32, i32) {
    %c0_i32 = arith.constant 0 : i32
    %c0_i32_0 = arith.constant 0 : i32
    return %arg0, %c0_i32 : i32, i32
  }
}

</mosaic_0001>

<bundles_post_ra>
// kernel: tpu_custom_call.1
= control target key start
LH: loop header
LB: loop body
LE: loop exit
PB: predicated region body
PF: predicated region fallthrough
CT: control target
= control target key end

     0   :  { %12 = vsyncpa [#allocation5], 0  ;;  %s1007_s0 = inlined_call_operand.vmem [shape: f32[16,3], index: 0, kind: input, shape index: {}]   ;;  %s1008_s1 = inlined_call_operand.vmem [shape: f32[3,256], index: 1, kind: input, shape index: {}]   ;;  %s1009_s2 = inlined_call_operand.vmem [shape: f32[1,256], index: 2, kind: input, shape index: {}]   ;;  %s1010_s3 = inlined_call_operand.hbm [shape: bf16[256,256], index: 3, kind: input, shape index: {}]   ;;  %s1011_s4 = inlined_call_operand.vmem [shape: f32[1,256], index: 4, kind: input, shape index: {}]   ;;  %s1012_s5 = inlined_call_operand.hbm [shape: bf16[256,128], index: 5, kind: input, shape index: {}]   ;;  %s1013_s6 = inlined_call_operand.vmem [shape: f32[1,128], index: 6, kind: input, shape index: {}]   ;;  %s1014_s7 = inlined_call_operand.hbm [shape: f32[16,128], index: 7, kind: output, shape index: {}]  }
   0x1   :  { %13 = vsyncpa [#allocation8], 0 }
   0x2   :  { %14 = vsyncpa [#allocation6], 0  ;;  %s910_s24 = smov [#allocation4]  }
   0x3   :  { %s26_s25 = sshll.u32 %s910_s24, 4  ;;  %s27_s25 = int_to_ptr.vmem [resolvable:$true] %s26_s25 }
   0x4   :  { %s852_s26 = scalar_lea.vmem %s27_s25, 4096  ;;  %p857_p1 = scmp.lt.s32.totalorder %s27_s25, %s27_s25 }
   0x5   :  { %p853_p0 = scmp.ne.s32.totalorder %s27_s25, %s852_s26  ;;  %p858_p2 = scmp.lt.s32.totalorder %s852_s26, %s852_s26 }
   0x7   :  { %p859_p3 = por %p858_p2, %p857_p1 }
   0x9   :  { %p860_p4 = pnand %p859_p3, %p853_p0 }
   0xb   :  { %863 = shalt.err (!%p860_p4)
}
   0xc   :  { %s911_s27 = smov 128   ;;  %s912_s28 = smov 8  }
   0xd   :  { %32 = dma.hbm_to_vmem [thread:$0]  %s1010_s3, 4096, %s27_s25, [#allocation5], %s911_s27, %s911_s27, %s912_s28  }
   0xe   :  { %s913_s8 = smov [#allocation7]  }
   0xf   :  { %s40_s9 = sshll.u32 %s913_s8, 4  ;;  %s41_s9 = int_to_ptr.vmem [resolvable:$true] %s40_s9 }
  0x10   :  { %s872_s10 = scalar_lea.vmem %s41_s9, 2048  ;;  %p877_p6 = scmp.lt.s32.totalorder %s41_s9, %s41_s9 }
  0x11   :  { %p873_p5 = scmp.ne.s32.totalorder %s41_s9, %s872_s10  ;;  %p878_p7 = scmp.lt.s32.totalorder %s872_s10, %s872_s10 }
  0x13   :  { %p879_p8 = por %p878_p7, %p877_p6 }
  0x15   :  { %p880_p9 = pnand %p879_p8, %p873_p5 }
  0x17   :  { %883 = shalt.err (!%p880_p9)
}
  0x18   :  { %s914_s11 = smov 64   ;;  %s915_s12 = smov 4  }
  0x19   :  { %46 = dma.hbm_to_vmem [thread:$0]  %s1012_s5, 2048, %s41_s9, [#allocation8], %s914_s11, %s914_s11, %s915_s12  }
  0x1a   :  { %904 = dma.done.wait [#allocation5], 4096  }
  0x1b   :  { %905 = vsyncadd [#allocation5], 4294963200 }
  0x1c   :  { %906 = dma.done.wait [#allocation8], 2048  }
  0x1d   :  { %907 = vsyncadd [#allocation8], 4294965248  ;;  %v916_v0 = vmov 1   ;;  %v917_v1 = vmov 0   ;;  %v56_v2 = vld [vmem:[%s1007_s0] sm:$0xff]  ;;  %v57_v3 = vld [vmem:[%s1007_s0 + $0x8] sm:$0xff]  ;;  %v71_v47 = vlaneseq }
  0x1e   :  { %777 = vset.pattern.permute.xlu1 %v916_v0  ;;  %776 = vset.pattern.permute.xlu0 %v917_v1  ;;  %v780_v4 = vld [vmem:[#allocation4 + $0x74] ss:$8 sps:$4 sm:$0xff]   ;;  %v782_v5 = vld [vmem:[#allocation4 + $0x70] ss:$8 sps:$4 sm:$0xff]   ;;  %v783_v6 = vld [vmem:[#allocation4 + $0x64] ss:$8 sps:$4 sm:$0xff]  }
  0x1f   :  { %109 = vperm.xlu1 %777, %v56_v2   ;;  %62 = vperm.xlu0 %776, %v56_v2   ;;  %v785_v7 = vld [vmem:[#allocation4 + $0x60] ss:$8 sps:$4 sm:$0xff]   ;;  %v786_v8 = vld [vmem:[#allocation4 + $0x54] ss:$8 sps:$4 sm:$0xff]   ;;  %v788_v9 = vld [vmem:[#allocation4 + $0x50] ss:$8 sps:$4 sm:$0xff]  }
  0x20   :  { %410 = vmatprep.subr.bf16.mxu0 %v780_v4  ;;  %v918_v10 = vmov 2   ;;  %v789_v11 = vld [vmem:[#allocation4 + $0x44] ss:$8 sps:$4 sm:$0xff]   ;;  %v791_v12 = vld [vmem:[#allocation4 + $0x40] ss:$8 sps:$4 sm:$0xff]   ;;  %v828_v20 = vld [vmem:[#allocation7 + $0x78] sm:$0xff]  }
  0x21   :  { %411 = vmatpush1.bf16.msra.mxu0 %v782_v5  ;;  %v792_v13 = vld [vmem:[#allocation4 + $0x34] ss:$8 sps:$4 sm:$0xff]   ;;  %v794_v14 = vld [vmem:[#allocation4 + $0x30] ss:$8 sps:$4 sm:$0xff]   ;;  %v795_v15 = vld [vmem:[#allocation4 + $0x24] ss:$8 sps:$4 sm:$0xff]   ;;  %744 = vmatprep.subr.bf16.mxu1 %v828_v20 }
  0x22   :  { %412 = vmatprep.subr.bf16.mxu0 %v783_v6  ;;  %v797_v16 = vld [vmem:[#allocation4 + $0x20] ss:$8 sps:$4 sm:$0xff]   ;;  %v798_v17 = vld [vmem:[#allocation4 + $0x14] ss:$8 sps:$4 sm:$0xff]   ;;  %v800_v18 = vld [vmem:[#allocation4 + $0x10] ss:$8 sps:$4 sm:$0xff]  }
  0x23   :  { %113 = vperm.xlu1 %777, %v57_v3   ;;  %67 = vperm.xlu0 %776, %v57_v3   ;;  %v801_v19 = vld [vmem:[#allocation4 + $0x4] ss:$8 sps:$4 sm:$0xff]   ;;  %v829_v21 = vld [vmem:[#allocation7 + $0x38] sm:$0xff]   ;;  %v830_v22 = vld [vmem:[#allocation7 + $0x70] sm:$0xff]   ;;  %v72_v48 = vshrl.u32 %v71_v47, 7  ;;  %s919_s21 = smov [#allocation9]  }
  0x24   :  { %745 = vmatpush3.bf16.msra.mxu1 %v829_v21  ;;  %v831_v23 = vld [vmem:[#allocation7 + $0x30] sm:$0xff]   ;;  %v832_v24 = vld [vmem:[#allocation7 + $0x68] sm:$0xff]   ;;  %v834_v29 = vld [vmem:[#allocation7 + $0x60] sm:$0xff]   ;;  %s666_s22 = sshll.u32 %s919_s21, 4  ;;  %s667_s22 = int_to_ptr.vmem [resolvable:$true] %s666_s22 }
  0x25   :  { %413 = vmatpush1.bf16.msra.mxu0 %v785_v7  ;;  %746 = vmatprep.subr.bf16.mxu1 %v830_v22  ;;  %v803_v25 = vld [vmem:[#allocation4] ss:$8 sps:$4 sm:$0xff]   ;;  %v804_v26 = vld [vmem:[#allocation4 + $0xf4] ss:$8 sps:$4 sm:$0xff]   ;;  %v806_v27 = vld [vmem:[#allocation4 + $0xf0] ss:$8 sps:$4 sm:$0xff]   ;;  %p889_p11 = scmp.lt.s32.totalorder %s667_s22, %s667_s22 }
  0x26   :  { %414 = vmatprep.subr.bf16.mxu0 %v786_v8  ;;  %v833_v28 = vld [vmem:[#allocation7 + $0x28] sm:$0xff]   ;;  %v835_v31 = vld [vmem:[#allocation7 + $0x20] sm:$0xff]   ;;  %v836_v32 = vld [vmem:[#allocation7 + $0x58] sm:$0xff]   ;;  %v975_v49 = vsub.s32 0, %v72_v48  ;;  %v77_v50 = vsub.s32 4, %v72_v48  ;;  %v981_v54 = vsub.s32 1, %v72_v48 }
  0x27   :  { %779 = vset.pattern.permute.xlu1 %v918_v10  ;;  %778 = vset.pattern.permute.xlu0 %v918_v10  ;;  %v807_v30 = vld [vmem:[#allocation4 + $0xe4] ss:$8 sps:$4 sm:$0xff]   ;;  %v809_v33 = vld [vmem:[#allocation4 + $0xe0] ss:$8 sps:$4 sm:$0xff]   ;;  %v810_v34 = vld [vmem:[#allocation4 + $0xd4] ss:$8 sps:$4 sm:$0xff]  }
  0x28   :  { %147 = vperm.xlu1 %779, %v57_v3   ;;  %143 = vperm.xlu0 %778, %v56_v2   ;;  %v837_v35 = vld [vmem:[#allocation7 + $0x18] sm:$0xff]   ;;  %v813_v37 = vld [vmem:[#allocation4 + $0xc4] ss:$8 sps:$4 sm:$0xff]   ;;  %v815_v38 = vld [vmem:[#allocation4 + $0xc0] ss:$8 sps:$4 sm:$0xff]   ;;  %v122_v55 = vsub.s32 5, %v72_v48 }
  0x29   :  { %415 = vmatpush1.bf16.msra.mxu0 %v788_v9  ;;  %747 = vmatpush3.bf16.msra.mxu1 %v831_v23  ;;  %v812_v36 = vld [vmem:[#allocation4 + $0xd0] ss:$8 sps:$4 sm:$0xff]   ;;  %v816_v39 = vld [vmem:[#allocation4 + $0xb4] ss:$8 sps:$4 sm:$0xff]   ;;  %v819_v41 = vld [vmem:[#allocation4 + $0xa4] ss:$8 sps:$4 sm:$0xff]  }
  0x2a   :  { %416 = vmatprep.subr.bf16.mxu0 %v789_v11  ;;  %748 = vmatprep.subr.bf16.mxu1 %v832_v24  ;;  %v818_v40 = vld [vmem:[#allocation4 + $0xb0] ss:$8 sps:$4 sm:$0xff]   ;;  %v821_v42 = vld [vmem:[#allocation4 + $0xa0] ss:$8 sps:$4 sm:$0xff]   ;;  %v822_v43 = vld [vmem:[#allocation4 + $0x94] ss:$8 sps:$4 sm:$0xff]  }
  0x2b   :  { %v824_v44 = vld [vmem:[#allocation4 + $0x90] ss:$8 sps:$4 sm:$0xff]   ;;  %v825_v45 = vld [vmem:[#allocation4 + $0x84] ss:$8 sps:$4 sm:$0xff]   ;;  %v827_v46 = vld [vmem:[#allocation4 + $0x80] ss:$8 sps:$4 sm:$0xff]  }
  0x2c   :  { %v58_v51 = vld [vmem:[%s1008_s1] sm:$0x77]  ;;  %v152_v61 = vsub.s32 2, %v72_v48  ;;  %v156_v62 = vsub.s32 6, %v72_v48  ;;  %s884_s23 = scalar_lea.vmem %s667_s22, 256 }
  0x2d   :  { %417 = vmatpush1.bf16.msra.mxu0 %v791_v12  ;;  %749 = vmatpush3.bf16.msra.mxu1 %v833_v28  ;;  %v74_v52 = vrot.slane %v58_v51, %v975_v49  ;;  %v78_v53 = vrot.slane %v58_v51, %v77_v50  ;;  %v119_v58 = vrot.slane %v58_v51, %v981_v54  ;;  %v59_v60 = vld [vmem:[%s1009_s2] sm:$0x3]  ;;  %p885_p10 = scmp.ne.s32.totalorder %s667_s22, %s884_s23  ;;  %p890_p12 = scmp.lt.s32.totalorder %s884_s23, %s884_s23 }
  0x2e   :  { %418 = vmatprep.subr.bf16.mxu0 %v792_v13  ;;  %750 = vmatprep.subr.bf16.mxu1 %v834_v29  ;;  %v123_v59 = vrot.slane %v58_v51, %v122_v55  ;;  %v97_v1 = vrot.slane %v59_v60, %v975_v49  ;;  %v101_v2 = vrot.slane %v59_v60, %v981_v54  ;;  %v842_v47 = vld [vmem:[#allocation7 + $0x40] sm:$0xff]  }
  0x2f   :  { %v84_v56 = vrot.slane %v74_v52, %v975_v49  ;;  %v88_v57 = vrot.slane %v78_v53, %v975_v49  ;;  %v129_v5 = vrot.slane %v119_v58, %v981_v54  ;;  %v153_v7 = vrot.slane %v58_v51, %v152_v61  ;;  %v843_v48 = vld [vmem:[#allocation7] sm:$0xff]   ;;  %p891_p13 = por %p890_p12, %p889_p11 }
  0x30   :  { %v133_v6 = vrot.slane %v123_v59, %v981_v54  ;;  %v157_v8 = vrot.slane %v58_v51, %v156_v62  ;;  %v228_v50 = vld [vmem:[%s1011_s4] sm:$0x3] }
  0x31   :  { %419 = vmatpush1.bf16.msra.mxu0 %v794_v14  ;;  %751 = vmatpush3.bf16.msra.mxu1 %v835_v31  ;;  %v237_v52 = vrot.slane %v228_v50, %v981_v54  ;;  %v233_v53 = vrot.slane %v228_v50, %v975_v49  ;;  %v717_v49 = vld [vmem:[%s1013_s6] ss:$0 sm:$0xff]  ;;  %p892_p0 = pnand %p891_p13, %p885_p10 }
  0x32   :  { %420 = vmatprep.subr.bf16.mxu0 %v795_v15  ;;  %752 = vmatprep.subr.bf16.mxu1 %v836_v32 }
  0x35   :  { %421 = vmatpush1.bf16.msra.mxu0 %v797_v16  ;;  %753 = vmatpush3.bf16.msra.mxu1 %v837_v35 }
  0x36   :  { %422 = vmatprep.subr.bf16.mxu0 %v798_v17  ;;  %v163_v17 = vrot.slane %v153_v7, %v152_v61 }
  0x39   :  { %423 = vmatpush1.bf16.msra.mxu0 %v800_v18  ;;  %v167_v18 = vrot.slane %v157_v8, %v152_v61 }
  0x3a   :  { %424 = vmatprep.subr.bf16.mxu0 %v801_v19 }
  0x3d   :  { %425 = vmatpush1.bf16.msra.mxu0 %v803_v25 }
  0x3e   :  { %426 = vmatprep.subr.bf16.mxu0 %v804_v26 }
  0x41   :  { %427 = vmatpush2.bf16.msra.mxu0 %v806_v27 }
  0x42   :  { %428 = vmatprep.subr.bf16.mxu0 %v807_v30 }
  0x45   :  { %429 = vmatpush2.bf16.msra.mxu0 %v809_v33 }
  0x46   :  { %430 = vmatprep.subr.bf16.mxu0 %v810_v34 }
  0x49   :  { %431 = vmatpush2.bf16.msra.mxu0 %v812_v36 }
  0x4a   :  { %432 = vmatprep.subr.bf16.mxu0 %v813_v37 }
  0x4d   :  { %433 = vmatpush2.bf16.msra.mxu0 %v815_v38 }
  0x4e   :  { %434 = vmatprep.subr.bf16.mxu0 %v816_v39 }
  0x51   :  { %435 = vmatpush2.bf16.msra.mxu0 %v818_v40 }
  0x52   :  { %436 = vmatprep.subr.bf16.mxu0 %v819_v41 }
  0x55   :  { %437 = vmatpush2.bf16.msra.mxu0 %v821_v42 }
  0x56   :  { %438 = vmatprep.subr.bf16.mxu0 %v822_v43  ;;  %v838_v43 = vld [vmem:[#allocation7 + $0x50] sm:$0xff]  }
  0x57   :  { %754 = vmatprep.subr.bf16.mxu1 %v838_v43 }
  0x59   :  { %439 = vmatpush2.bf16.msra.mxu0 %v824_v44  ;;  %v839_v44 = vld [vmem:[#allocation7 + $0x10] sm:$0xff]  }
  0x5a   :  { %440 = vmatprep.subr.bf16.mxu0 %v825_v45  ;;  %755 = vmatpush3.bf16.msra.mxu1 %v839_v44  ;;  %v840_v45 = vld [vmem:[#allocation7 + $0x48] sm:$0xff]  }
  0x5b   :  { %756 = vmatprep.subr.bf16.mxu1 %v840_v45 }
  0x5d   :  { %441 = vmatpush2.bf16.msra.mxu0 %v827_v46  ;;  %v841_v46 = vld [vmem:[#allocation7 + $0x8] sm:$0xff]  }
  0x5e   :  { %757 = vmatpush3.bf16.msra.mxu1 %v841_v46 }
  0x5f   :  { %758 = vmatprep.subr.bf16.mxu1 %v842_v47 }
  0x62   :  { %759 = vmatpush3.bf16.msra.mxu1 %v843_v48 }
  0x9a   :  { %v110_v63 = vpop.permute.xlu1 %109  ;;  %v63_v0 = vpop.permute.xlu0 %62 }
  0x9b   :  { %v89_v3 = vmul.f32 %v84_v56, %v63_v0  ;;  %v90_v4 = vmul.f32 %v88_v57, %v63_v0  ;;  %v134_v15 = vmul.f32 %v129_v5, %v110_v63  ;;  %v135_v16 = vmul.f32 %v133_v6, %v110_v63 }
  0x9d   :  { %v104_v11 = vadd.f32 %v97_v1, %v89_v3  ;;  %v105_v12 = vadd.f32 %v101_v2, %v90_v4 }
  0x9e   :  { %v114_v9 = vpop.permute.xlu1 %113  ;;  %v68_v10 = vpop.permute.xlu0 %67 }
  0x9f   :  { %v91_v13 = vmul.f32 %v84_v56, %v68_v10  ;;  %v92_v14 = vmul.f32 %v88_v57, %v68_v10  ;;  %v136_v19 = vmul.f32 %v129_v5, %v114_v9  ;;  %v137_v20 = vmul.f32 %v133_v6, %v114_v9 }
  0xa0   :  { %v138_v25 = vadd.f32 %v134_v15, %v104_v11  ;;  %v139_v27 = vadd.f32 %v135_v16, %v105_v12 }
  0xa1   :  { %v106_v21 = vadd.f32 %v97_v1, %v91_v13  ;;  %v107_v22 = vadd.f32 %v101_v2, %v92_v14 }
  0xa3   :  { %v148_v23 = vpop.permute.xlu1 %147  ;;  %v140_v24 = vadd.f32 %v136_v19, %v106_v21  ;;  %v144_v26 = vpop.permute.xlu0 %143  ;;  %v141_v28 = vadd.f32 %v137_v20, %v107_v22 }
  0xa4   :  { %v170_v29 = vmul.f32 %v163_v17, %v148_v23  ;;  %v171_v30 = vmul.f32 %v167_v18, %v148_v23  ;;  %v168_v31 = vmul.f32 %v163_v17, %v144_v26  ;;  %v169_v32 = vmul.f32 %v167_v18, %v144_v26 }
  0xa6   :  { %v174_v33 = vadd.f32 %v170_v29, %v140_v24  ;;  %v172_v34 = vadd.f32 %v168_v31, %v138_v25  ;;  %v173_v35 = vadd.f32 %v169_v32, %v139_v27  ;;  %v175_v36 = vadd.f32 %v171_v30, %v141_v28 }
  0xa8   :  { %v178_v37 = vmax.f32 %v174_v33, 0.0  ;;  %v176_v38 = vmax.f32 %v172_v34, 0.0  ;;  %v177_v39 = vmax.f32 %v173_v35, 0.0  ;;  %v179_v40 = vmax.f32 %v175_v36, 0.0 }
  0xaa   :  { %v741_v41 = vpack.c.bf16 %v179_v40, %v177_v39  ;;  %v740_v42 = vpack.c.bf16 %v178_v37, %v176_v38 }
  0xac   :  { %442 = vmatprep.mubr.bf16.mxu0 %v741_v41 }
  0xad   :  { %443 = vmatmul.mubr.bf16.vlgmr.msra.gmra.mxu0 %v740_v42 }
 0x16d   :  { %v444_v51 = vpop.f32.mrf.mxu0 }
 0x16e   :  { %v445_v59 = vadd.f32 %v444_v51, %v233_v53 }
 0x16f   :  { %v446_v55 = vpop.f32.mrf.mxu0 }
 0x170   :  { %v447_v57 = vadd.f32 %v446_v55, %v237_v52  ;;  %v453_v1 = vmax.f32 %v445_v59, 0.0 }
 0x171   :  { %v448_v56 = vpop.f32.mrf.mxu0 }
 0x172   :  { %v449_v58 = vadd.f32 %v448_v56, %v233_v53  ;;  %v454_v63 = vmax.f32 %v447_v57, 0.0 }
 0x173   :  { %v450_v60 = vpop.f32.mrf.mxu0 }
 0x174   :  { %v451_v61 = vadd.f32 %v450_v60, %v237_v52  ;;  %v455_v62 = vmax.f32 %v449_v58, 0.0 }
 0x176   :  { %v456_v0 = vmax.f32 %v451_v61, 0.0  ;;  %v742_v3 = vpack.c.bf16 %v455_v62, %v453_v1 }
 0x178   :  { %v743_v2 = vpack.c.bf16 %v456_v0, %v454_v63 }
 0x17a   :  { %650 = vmatprep.mubr.bf16.mxu1 %v743_v2 }
 0x17b   :  { %651 = vmatmul.mubr.bf16.vlgmr.msra.gmra.mxu1 %v742_v3 }
 0x23b   :  { %v760_v4 = vpop.f32.mrf.mxu1 }
 0x23d   :  { %v761_v54 = vpop.f32.mrf.mxu1 }
 0x23e   :  { %v762_v5 = vadd.f32 %v761_v54, %v760_v4 }
 0x23f   :  { %v763_v6 = vpop.f32.mrf.mxu1 }
 0x240   :  { %v653_v7 = vadd.f32 %v762_v5, %v717_v49 }
 0x241   :  { %v764_v8 = vpop.f32.mrf.mxu1 }
 0x242   :  { %659 = vst [vmem:[#allocation9] sm:$0xff] %v653_v7  ;;  %v765_v9 = vadd.f32 %v764_v8, %v763_v6 }
 0x244   :  { %v656_v10 = vadd.f32 %v765_v9, %v717_v49 }
 0x246   :  { %660 = vst [vmem:[#allocation9 + $0x8] sm:$0xff] %v656_v10 }
 0x247   :  { %895 = shalt.err (!%p892_p0)
}
 0x248   :  { %672 = dma.vmem_to_hbm [thread:$0]  %s667_s22, 256, %s1014_s7, [#allocation6], %s911_s27, %s911_s27, %s912_s28  }
 0x249   :  { %908 = dma.done.wait [#allocation6], 256  }
 0x24a   :  { %909 = vsyncadd [#allocation6], 4294967040 }
 0x24b   :  { %676 = vsyncpa [#allocation5], 1 }
 0x24c   :  { %677 = vsyncpa [#allocation8], 1 }
 0x24d   :  { %678 = vsyncpa [#allocation6], 1 }

</bundles_post_ra>
